<compile_context>
chip_gen: v7x
topology: tpu7x:2x2x1
jax: 0.10.0
libtpu: 0.0.40
codegen_flags: <defaults>
</compile_context>

<pallas_src>
import functools

import jax
import jax.numpy as jnp
from jax.experimental import pallas as pl
from jax.experimental.pallas import tpu as pltpu


def _round_up(x, m):
    return (x + m - 1) // m * m


def _convlstm_kernel(x_ref, h_ref, c_ref, w_ref, b_ref,
                     hid_out_ref, cell_out_ref, patch_ref,
                     *, H, W, KH, KW, pad, cp_x, cp_h):
    # x_ref:        (1, cp_x, HW + 2*smax)   lane-zero-extended, channel-padded x
    # h_ref:        (1, cp_h, HW + 2*smax)   lane-zero-extended hidden
    # c_ref:        (1, h_ch, HW)            previous cell state
    # w_ref:        (4*h_ch, KH*KW*(cp_x+cp_h))   pre-transposed conv weights
    # b_ref:        (4*h_ch, 1)
    # hid_out_ref:  (1, h_ch, HW)
    # cell_out_ref: (1, h_ch, HW)
    # patch_ref:    (KH*KW*(cp_x+cp_h), HW)  VMEM scratch (im2col matrix)
    HW = H * W
    hc = c_ref.shape[1]
    G = cp_x + cp_h
    smax = pad * W + pad

    # Per-lane output column index -> mask for taps whose W-shift would wrap
    # across image rows in the flattened (H*W) layout.  One mask per distinct
    # horizontal offset, computed once (trace-time unrolled).
    col_masks = {}
    if KW > 1:
        col = jax.lax.broadcasted_iota(jnp.int32, (1, HW), 1) % W
        for kw in range(KW):
            dx = kw - pad
            if dx != 0:
                col_masks[dx] = jnp.logical_and(col + dx >= 0, col + dx < W)

    # Build the im2col patch matrix: one 8-aligned row block per kernel tap.
    # Vertical (H) out-of-range taps read the zero lane-extension for free.
    for kh in range(KH):
        for kw in range(KW):
            dy = kh - pad
            dx = kw - pad
            start = smax + dy * W + dx                # static, always >= 0
            sx = x_ref[0, :, start:start + HW]        # (cp_x, HW)
            sh = h_ref[0, :, start:start + HW]        # (cp_h, HW)
            if dx != 0:
                m = col_masks[dx]
                sx = jnp.where(m, sx, jnp.zeros_like(sx))
                sh = jnp.where(m, sh, jnp.zeros_like(sh))
            g0 = (kh * KW + kw) * G
            patch_ref[g0:g0 + cp_x, :] = sx
            patch_ref[g0 + cp_x:g0 + G, :] = sh

    # Single fused conv matmul on the MXU, f32 accumulation, plus bias.
    acc = jnp.dot(w_ref[...], patch_ref[...],
                  preferred_element_type=jnp.float32)     # (4*hc, HW)
    acc = acc + b_ref[...].astype(jnp.float32)

    # Gate order matches torch.split(combined, h_ch, dim=1): i, f, g, o.
    i_g = jax.nn.sigmoid(acc[0 * hc:1 * hc])
    f_g = jax.nn.sigmoid(acc[1 * hc:2 * hc])
    g_g = jnp.tanh(acc[2 * hc:3 * hc])
    o_g = jax.nn.sigmoid(acc[3 * hc:4 * hc])

    c_prev = c_ref[0].astype(jnp.float32)                 # (hc, HW)
    c_new = f_g * c_prev + i_g * g_g
    h_new = o_g * jnp.tanh(c_new)

    hid_out_ref[0] = h_new.astype(hid_out_ref.dtype)
    cell_out_ref[0] = c_new.astype(cell_out_ref.dtype)


def lstm_conv2d_cell(x, state, weight, bias, *, in_ch, h_ch, kernel_size, padding):
    """Pallas ConvLSTM cell.  All tensors use PyTorch's NCHW convention.

    x:      (B, in_ch, H, W)
    state:  None or (hidden, cell), each (B, h_ch, H, W)
    weight: (4*h_ch, in_ch + h_ch, KH, KW)   (PyTorch conv weight layout)
    bias:   (4*h_ch,)
    Returns (hidden, (hidden, cell)), matching the PyTorch module.
    """
    B, _, H, W = x.shape
    KH = KW = kernel_size
    HW = H * W
    assert 2 * padding == KH - 1, \
        "spatial dims must be preserved (padding == kernel_size // 2, odd kernel)"
    # TODO(synk): groups != 1 (grouped conv) not implemented; groups=1 assumed.

    if state is None:
        zeros = jnp.zeros((B, h_ch, H, W), x.dtype)
        state = (zeros, zeros)
    hidden, cell = state

    cp_x = _round_up(in_ch, 8)        # channel round-up -> 8-aligned scratch rows
    cp_h = _round_up(h_ch, 8)
    G = cp_x + cp_h
    K_pad = KH * KW * G
    smax = padding * W + padding      # max |flattened-lane shift| over all taps
    Lp = HW + 2 * smax

    # NCHW is already channel-major: collapse spatial dims (free reshape) and
    # zero-extend the flattened lane axis so every conv tap is a static slice.
    x_fl = jnp.pad(x.reshape(B, in_ch, HW),
                   ((0, 0), (0, cp_x - in_ch), (smax, smax)))
    h_fl = jnp.pad(hidden.reshape(B, h_ch, HW),
                   ((0, 0), (0, cp_h - h_ch), (smax, smax)))
    c_fl = cell.reshape(B, h_ch, HW)

    # One-time weight plumbing: (out, in, kh, kw) -> (out, tap-major
    # [x-channels | hidden-channels]) matching the scratch row layout.
    w_x = jnp.pad(weight[:, :in_ch], ((0, 0), (0, cp_x - in_ch), (0, 0), (0, 0)))
    w_h = jnp.pad(weight[:, in_ch:], ((0, 0), (0, cp_h - h_ch), (0, 0), (0, 0)))
    w_grp = jnp.concatenate([w_x, w_h], axis=1)            # (4h, G, KH, KW)
    w_mat = jnp.transpose(w_grp, (0, 2, 3, 1)).reshape(4 * h_ch, K_pad)
    b_col = bias.reshape(4 * h_ch, 1)

    kernel = functools.partial(_convlstm_kernel, H=H, W=W, KH=KH, KW=KW,
                               pad=padding, cp_x=cp_x, cp_h=cp_h)

    hid_fl, cell_new_fl = pl.pallas_call(
        kernel,
        out_shape=(jax.ShapeDtypeStruct((B, h_ch, HW), x.dtype),
                   jax.ShapeDtypeStruct((B, h_ch, HW), x.dtype)),
        grid_spec=pltpu.PrefetchScalarGridSpec(
            num_scalar_prefetch=0,
            grid=(B,),
            in_specs=[
                pl.BlockSpec((1, cp_x, Lp), lambda b: (b, 0, 0)),
                pl.BlockSpec((1, cp_h, Lp), lambda b: (b, 0, 0)),
                pl.BlockSpec((1, h_ch, HW), lambda b: (b, 0, 0)),
                pl.BlockSpec((4 * h_ch, K_pad), lambda b: (0, 0)),
                pl.BlockSpec((4 * h_ch, 1), lambda b: (0, 0)),
            ],
            out_specs=[
                pl.BlockSpec((1, h_ch, HW), lambda b: (b, 0, 0)),
                pl.BlockSpec((1, h_ch, HW), lambda b: (b, 0, 0)),
            ],
            scratch_shapes=[pltpu.VMEM((K_pad, HW), x.dtype)],
        ),
        compiler_params=pltpu.CompilerParams(
            dimension_semantics=("parallel",)),
    )(x_fl, h_fl, c_fl, w_mat, b_col)

    hid = hid_fl.reshape(B, h_ch, H, W)
    cell_new = cell_new_fl.reshape(B, h_ch, H, W)
    return hid, (hid, cell_new)


def _reference(x, state, weight, bias, *, h_ch, padding):
    """Pure-JAX reference of the PyTorch forward (for correctness check)."""
    if state is None:
        zeros = jnp.zeros((x.shape[0], h_ch, x.shape[2], x.shape[3]), x.dtype)
        state = (zeros, zeros)
    hidden, cell = state
    combined = jnp.concatenate([x, hidden], axis=1)
    out = jax.lax.conv_general_dilated(
        combined, weight, window_strides=(1, 1),
        padding=[(padding, padding), (padding, padding)],
        dimension_numbers=("NCHW", "OIHW", "NCHW"))
    out = out + bias.reshape(1, -1, 1, 1)
    i, f, g, o = jnp.split(out, 4, axis=1)
    i, f, g, o = jax.nn.sigmoid(i), jax.nn.sigmoid(f), jnp.tanh(g), jax.nn.sigmoid(o)
    cell = f * cell + i * g
    hidden = o * jnp.tanh(cell)
    return hidden, (hidden, cell)


if __name__ == "__main__":
    # Small, PyTorch-module-consistent shapes.
    B, in_ch, h_ch, H, W = 2, 4, 8, 16, 16
    kernel_size, padding = 3, 1          # "same" conv so cell/hidden shapes match

    key = jax.random.PRNGKey(0)
    k_x, k_w, k_b, k_h, k_c = jax.random.split(key, 5)

    x = jax.random.normal(k_x, (B, in_ch, H, W), jnp.float32)

    # Deterministic parameter init (PyTorch default: U(-1/sqrt(fan_in), +1/sqrt(fan_in)))
    fan_in = (in_ch + h_ch) * kernel_size * kernel_size
    bound = 1.0 / (fan_in ** 0.5)
    weight = jax.random.uniform(k_w, (4 * h_ch, in_ch + h_ch, kernel_size, kernel_size),
                                jnp.float32, -bound, bound)
    bias = jax.random.uniform(k_b, (4 * h_ch,), jnp.float32, -bound, bound)

    # Non-trivial initial state (also exercises the state=None path below).
    hidden0 = jax.random.normal(k_h, (B, h_ch, H, W), jnp.float32)
    cell0 = jax.random.normal(k_c, (B, h_ch, H, W), jnp.float32)

    for st in [None, (hidden0, cell0)]:
        hid, (hid2, cell_new) = lstm_conv2d_cell(
            x, st, weight, bias,
            in_ch=in_ch, h_ch=h_ch, kernel_size=kernel_size, padding=padding)
        jax.block_until_ready(hid)
        jax.block_until_ready(cell_new)

        ref_hid, (_, ref_cell) = _reference(x, st, weight, bias,
                                            h_ch=h_ch, padding=padding)
        assert jnp.allclose(hid, ref_hid, atol=2e-5, rtol=2e-5), "hidden mismatch"
        assert jnp.allclose(cell_new, ref_cell, atol=2e-5, rtol=2e-5), "cell mismatch"

    print("KERNEL_OK")
</pallas_src>

<mosaic_0001>
module attributes {stable_mosaic.version = 11 : i64} {
  func.func @_convlstm_kernel(%arg0: i32, %arg1: memref<1x8x290xf32, #tpu.memory_space<vmem>>, %arg2: memref<1x8x290xf32, #tpu.memory_space<vmem>>, %arg3: memref<1x8x256xf32, #tpu.memory_space<vmem>>, %arg4: memref<32x144xf32, #tpu.memory_space<vmem>>, %arg5: memref<32x1xf32, #tpu.memory_space<vmem>>, %arg6: memref<1x8x256xf32, #tpu.memory_space<vmem>>, %arg7: memref<1x8x256xf32, #tpu.memory_space<vmem>>, %arg8: memref<144x256xf32, #tpu.memory_space<vmem>>) attributes {dimension_semantics = [#tpu.dimension_semantics<parallel>], iteration_bounds = array<i64: 2>, scalar_prefetch = 0 : i64, scratch_operands = 1 : i64, tpu.core_type = #tpu.core_type<tc>, window_params = [{transform_indices = @transform_0, window_bounds = array<i64: 1, 8, 290>}, {transform_indices = @transform_1, window_bounds = array<i64: 1, 8, 290>}, {transform_indices = @transform_2, window_bounds = array<i64: 1, 8, 256>}, {pipeline_mode = #tpu.pipeline_mode<synchronous>, transform_indices = @transform_3, window_bounds = array<i64: 32, 144>}, {pipeline_mode = #tpu.pipeline_mode<synchronous>, transform_indices = @transform_4, window_bounds = array<i64: 32, 1>}, {transform_indices = @transform_5, window_bounds = array<i64: 1, 8, 256>}, {transform_indices = @transform_6, window_bounds = array<i64: 1, 8, 256>}]} {
    %0 = tpu.iota {dimensions = array<i32: 1>} : vector<1x256xi32>
    %c16_i32 = arith.constant 16 : i32
    %c0_i32 = arith.constant 0 : i32
    %1 = arith.cmpi eq, %c16_i32, %c0_i32 : i32
    %c1_i32 = arith.constant 1 : i32
    %2 = arith.select %1, %c1_i32, %c16_i32 : i32
    %3 = vector.broadcast %2 : i32 to vector<1x256xi32>
    %4 = arith.remsi %0, %3 : vector<1x256xi32>
    %c0_i32_0 = arith.constant 0 : i32
    %5 = vector.broadcast %c0_i32_0 : i32 to vector<1x256xi32>
    %6 = arith.cmpi ne, %4, %5 : vector<1x256xi32>
    %c0_i32_1 = arith.constant 0 : i32
    %7 = vector.broadcast %c0_i32_1 : i32 to vector<1x256xi32>
    %8 = arith.cmpi slt, %4, %7 : vector<1x256xi32>
    %c0_i32_2 = arith.constant 0 : i32
    %9 = arith.cmpi slt, %2, %c0_i32_2 : i32
    %10 = vector.broadcast %9 : i1 to vector<1x256xi1>
    %11 = vector.broadcast %10 : vector<1x256xi1> to vector<1x256xi1>
    %12 = arith.xori %8, %11 : vector<1x256xi1>
    %13 = arith.andi %12, %6 : vector<1x256xi1>
    %14 = vector.broadcast %2 : i32 to vector<1x256xi32>
    %15 = arith.addi %4, %14 : vector<1x256xi32>
    %16 = arith.select %13, %15, %4 : vector<1x256xi1>, vector<1x256xi32>
    %c-1_i32 = arith.constant -1 : i32
    %17 = vector.broadcast %c-1_i32 : i32 to vector<1x256xi32>
    %18 = arith.addi %16, %17 : vector<1x256xi32>
    %c0_i32_3 = arith.constant 0 : i32
    %19 = vector.broadcast %c0_i32_3 : i32 to vector<1x256xi32>
    %20 = arith.cmpi sge, %18, %19 : vector<1x256xi32>
    %c-1_i32_4 = arith.constant -1 : i32
    %21 = vector.broadcast %c-1_i32_4 : i32 to vector<1x256xi32>
    %22 = arith.addi %16, %21 : vector<1x256xi32>
    %c16_i32_5 = arith.constant 16 : i32
    %23 = vector.broadcast %c16_i32_5 : i32 to vector<1x256xi32>
    %24 = arith.cmpi slt, %22, %23 : vector<1x256xi32>
    %25 = arith.andi %20, %24 : vector<1x256xi1>
    %c1_i32_6 = arith.constant 1 : i32
    %26 = vector.broadcast %c1_i32_6 : i32 to vector<1x256xi32>
    %27 = arith.addi %16, %26 : vector<1x256xi32>
    %c0_i32_7 = arith.constant 0 : i32
    %28 = vector.broadcast %c0_i32_7 : i32 to vector<1x256xi32>
    %29 = arith.cmpi sge, %27, %28 : vector<1x256xi32>
    %c1_i32_8 = arith.constant 1 : i32
    %30 = vector.broadcast %c1_i32_8 : i32 to vector<1x256xi32>
    %31 = arith.addi %16, %30 : vector<1x256xi32>
    %c16_i32_9 = arith.constant 16 : i32
    %32 = vector.broadcast %c16_i32_9 : i32 to vector<1x256xi32>
    %33 = arith.cmpi slt, %31, %32 : vector<1x256xi32>
    %34 = arith.andi %29, %33 : vector<1x256xi1>
    %c0 = arith.constant 0 : index
    %c0_10 = arith.constant 0 : index
    %c0_11 = arith.constant 0 : index
    %35 = vector.load %arg1[%c0, %c0_10, %c0_11] : memref<1x8x290xf32, #tpu.memory_space<vmem>>, vector<1x8x256xf32>
    %36 = vector.shape_cast %35 : vector<1x8x256xf32> to vector<8x256xf32>
    %c0_12 = arith.constant 0 : index
    %c0_13 = arith.constant 0 : index
    %c0_14 = arith.constant 0 : index
    %37 = vector.load %arg2[%c0_12, %c0_13, %c0_14] : memref<1x8x290xf32, #tpu.memory_space<vmem>>, vector<1x8x256xf32>
    %38 = vector.shape_cast %37 : vector<1x8x256xf32> to vector<8x256xf32>
    %cst = arith.constant 0.000000e+00 : f32
    %39 = vector.broadcast %cst : f32 to vector<8x256xf32>
    %40 = vector.shape_cast %25 : vector<1x256xi1> to vector<1x256xi1>
    %41 = vector.broadcast %40 : vector<1x256xi1> to vector<8x256xi1>
    %42 = arith.select %41, %36, %39 : vector<8x256xi1>, vector<8x256xf32>
    %cst_15 = arith.constant 0.000000e+00 : f32
    %43 = vector.broadcast %cst_15 : f32 to vector<8x256xf32>
    %44 = vector.shape_cast %25 : vector<1x256xi1> to vector<1x256xi1>
    %45 = vector.broadcast %44 : vector<1x256xi1> to vector<8x256xi1>
    %46 = arith.select %45, %38, %43 : vector<8x256xi1>, vector<8x256xf32>
    %c0_16 = arith.constant 0 : index
    %c0_17 = arith.constant 0 : index
    %47 = vector.load %arg8[%c0_16, %c0_17] : memref<144x256xf32, #tpu.memory_space<vmem>>, vector<8x256xf32>
    tpu.vector_store %arg8[%c0_16, %c0_17], %42 {strides = array<i32>} : memref<144x256xf32, #tpu.memory_space<vmem>>, vector<8x256xf32>,
    %c8 = arith.constant 8 : index
    %c0_18 = arith.constant 0 : index
    %48 = vector.load %arg8[%c8, %c0_18] : memref<144x256xf32, #tpu.memory_space<vmem>>, vector<8x256xf32>
    tpu.vector_store %arg8[%c8, %c0_18], %46 {strides = array<i32>} : memref<144x256xf32, #tpu.memory_space<vmem>>, vector<8x256xf32>,
    %c0_19 = arith.constant 0 : index
    %c0_20 = arith.constant 0 : index
    %c1 = arith.constant 1 : index
    %49 = vector.load %arg1[%c0_19, %c0_20, %c1] : memref<1x8x290xf32, #tpu.memory_space<vmem>>, vector<1x8x256xf32>
    %50 = vector.shape_cast %49 : vector<1x8x256xf32> to vector<8x256xf32>
    %c0_21 = arith.constant 0 : index
    %c0_22 = arith.constant 0 : index
    %c1_23 = arith.constant 1 : index
    %51 = vector.load %arg2[%c0_21, %c0_22, %c1_23] : memref<1x8x290xf32, #tpu.memory_space<vmem>>, vector<1x8x256xf32>
    %52 = vector.shape_cast %51 : vector<1x8x256xf32> to vector<8x256xf32>
    %c16 = arith.constant 16 : index
    %c0_24 = arith.constant 0 : index
    %53 = vector.load %arg8[%c16, %c0_24] : memref<144x256xf32, #tpu.memory_space<vmem>>, vector<8x256xf32>
    tpu.vector_store %arg8[%c16, %c0_24], %50 {strides = array<i32>} : memref<144x256xf32, #tpu.memory_space<vmem>>, vector<8x256xf32>,
    %c24 = arith.constant 24 : index
    %c0_25 = arith.constant 0 : index
    %54 = vector.load %arg8[%c24, %c0_25] : memref<144x256xf32, #tpu.memory_space<vmem>>, vector<8x256xf32>
    tpu.vector_store %arg8[%c24, %c0_25], %52 {strides = array<i32>} : memref<144x256xf32, #tpu.memory_space<vmem>>, vector<8x256xf32>,
    %c0_26 = arith.constant 0 : index
    %c0_27 = arith.constant 0 : index
    %c2 = arith.constant 2 : index
    %55 = vector.load %arg1[%c0_26, %c0_27, %c2] : memref<1x8x290xf32, #tpu.memory_space<vmem>>, vector<1x8x256xf32>
    %56 = vector.shape_cast %55 : vector<1x8x256xf32> to vector<8x256xf32>
    %c0_28 = arith.constant 0 : index
    %c0_29 = arith.constant 0 : index
    %c2_30 = arith.constant 2 : index
    %57 = vector.load %arg2[%c0_28, %c0_29, %c2_30] : memref<1x8x290xf32, #tpu.memory_space<vmem>>, vector<1x8x256xf32>
    %58 = vector.shape_cast %57 : vector<1x8x256xf32> to vector<8x256xf32>
    %cst_31 = arith.constant 0.000000e+00 : f32
    %59 = vector.broadcast %cst_31 : f32 to vector<8x256xf32>
    %60 = vector.shape_cast %34 : vector<1x256xi1> to vector<1x256xi1>
    %61 = vector.broadcast %60 : vector<1x256xi1> to vector<8x256xi1>
    %62 = arith.select %61, %56, %59 : vector<8x256xi1>, vector<8x256xf32>
    %cst_32 = arith.constant 0.000000e+00 : f32
    %63 = vector.broadcast %cst_32 : f32 to vector<8x256xf32>
    %64 = vector.shape_cast %34 : vector<1x256xi1> to vector<1x256xi1>
    %65 = vector.broadcast %64 : vector<1x256xi1> to vector<8x256xi1>
    %66 = arith.select %65, %58, %63 : vector<8x256xi1>, vector<8x256xf32>
    %c32 = arith.constant 32 : index
    %c0_33 = arith.constant 0 : index
    %67 = vector.load %arg8[%c32, %c0_33] : memref<144x256xf32, #tpu.memory_space<vmem>>, vector<8x256xf32>
    tpu.vector_store %arg8[%c32, %c0_33], %62 {strides = array<i32>} : memref<144x256xf32, #tpu.memory_space<vmem>>, vector<8x256xf32>,
    %c40 = arith.constant 40 : index
    %c0_34 = arith.constant 0 : index
    %68 = vector.load %arg8[%c40, %c0_34] : memref<144x256xf32, #tpu.memory_space<vmem>>, vector<8x256xf32>
    tpu.vector_store %arg8[%c40, %c0_34], %66 {strides = array<i32>} : memref<144x256xf32, #tpu.memory_space<vmem>>, vector<8x256xf32>,
    %c0_35 = arith.constant 0 : index
    %c0_36 = arith.constant 0 : index
    %c16_37 = arith.constant 16 : index
    %69 = vector.load %arg1[%c0_35, %c0_36, %c16_37] : memref<1x8x290xf32, #tpu.memory_space<vmem>>, vector<1x8x256xf32>
    %70 = vector.shape_cast %69 : vector<1x8x256xf32> to vector<8x256xf32>
    %c0_38 = arith.constant 0 : index
    %c0_39 = arith.constant 0 : index
    %c16_40 = arith.constant 16 : index
    %71 = vector.load %arg2[%c0_38, %c0_39, %c16_40] : memref<1x8x290xf32, #tpu.memory_space<vmem>>, vector<1x8x256xf32>
    %72 = vector.shape_cast %71 : vector<1x8x256xf32> to vector<8x256xf32>
    %cst_41 = arith.constant 0.000000e+00 : f32
    %73 = vector.broadcast %cst_41 : f32 to vector<8x256xf32>
    %74 = vector.shape_cast %25 : vector<1x256xi1> to vector<1x256xi1>
    %75 = vector.broadcast %74 : vector<1x256xi1> to vector<8x256xi1>
    %76 = arith.select %75, %70, %73 : vector<8x256xi1>, vector<8x256xf32>
    %cst_42 = arith.constant 0.000000e+00 : f32
    %77 = vector.broadcast %cst_42 : f32 to vector<8x256xf32>
    %78 = vector.shape_cast %25 : vector<1x256xi1> to vector<1x256xi1>
    %79 = vector.broadcast %78 : vector<1x256xi1> to vector<8x256xi1>
    %80 = arith.select %79, %72, %77 : vector<8x256xi1>, vector<8x256xf32>
    %c48 = arith.constant 48 : index
    %c0_43 = arith.constant 0 : index
    %81 = vector.load %arg8[%c48, %c0_43] : memref<144x256xf32, #tpu.memory_space<vmem>>, vector<8x256xf32>
    tpu.vector_store %arg8[%c48, %c0_43], %76 {strides = array<i32>} : memref<144x256xf32, #tpu.memory_space<vmem>>, vector<8x256xf32>,
    %c56 = arith.constant 56 : index
    %c0_44 = arith.constant 0 : index
    %82 = vector.load %arg8[%c56, %c0_44] : memref<144x256xf32, #tpu.memory_space<vmem>>, vector<8x256xf32>
    tpu.vector_store %arg8[%c56, %c0_44], %80 {strides = array<i32>} : memref<144x256xf32, #tpu.memory_space<vmem>>, vector<8x256xf32>,
    %c0_45 = arith.constant 0 : index
    %c0_46 = arith.constant 0 : index
    %c17 = arith.constant 17 : index
    %83 = vector.load %arg1[%c0_45, %c0_46, %c17] : memref<1x8x290xf32, #tpu.memory_space<vmem>>, vector<1x8x256xf32>
    %84 = vector.shape_cast %83 : vector<1x8x256xf32> to vector<8x256xf32>
    %c0_47 = arith.constant 0 : index
    %c0_48 = arith.constant 0 : index
    %c17_49 = arith.constant 17 : index
    %85 = vector.load %arg2[%c0_47, %c0_48, %c17_49] : memref<1x8x290xf32, #tpu.memory_space<vmem>>, vector<1x8x256xf32>
    %86 = vector.shape_cast %85 : vector<1x8x256xf32> to vector<8x256xf32>
    %c64 = arith.constant 64 : index
    %c0_50 = arith.constant 0 : index
    %87 = vector.load %arg8[%c64, %c0_50] : memref<144x256xf32, #tpu.memory_space<vmem>>, vector<8x256xf32>
    tpu.vector_store %arg8[%c64, %c0_50], %84 {strides = array<i32>} : memref<144x256xf32, #tpu.memory_space<vmem>>, vector<8x256xf32>,
    %c72 = arith.constant 72 : index
    %c0_51 = arith.constant 0 : index
    %88 = vector.load %arg8[%c72, %c0_51] : memref<144x256xf32, #tpu.memory_space<vmem>>, vector<8x256xf32>
    tpu.vector_store %arg8[%c72, %c0_51], %86 {strides = array<i32>} : memref<144x256xf32, #tpu.memory_space<vmem>>, vector<8x256xf32>,
    %c0_52 = arith.constant 0 : index
    %c0_53 = arith.constant 0 : index
    %c18 = arith.constant 18 : index
    %89 = vector.load %arg1[%c0_52, %c0_53, %c18] : memref<1x8x290xf32, #tpu.memory_space<vmem>>, vector<1x8x256xf32>
    %90 = vector.shape_cast %89 : vector<1x8x256xf32> to vector<8x256xf32>
    %c0_54 = arith.constant 0 : index
    %c0_55 = arith.constant 0 : index
    %c18_56 = arith.constant 18 : index
    %91 = vector.load %arg2[%c0_54, %c0_55, %c18_56] : memref<1x8x290xf32, #tpu.memory_space<vmem>>, vector<1x8x256xf32>
    %92 = vector.shape_cast %91 : vector<1x8x256xf32> to vector<8x256xf32>
    %cst_57 = arith.constant 0.000000e+00 : f32
    %93 = vector.broadcast %cst_57 : f32 to vector<8x256xf32>
    %94 = vector.shape_cast %34 : vector<1x256xi1> to vector<1x256xi1>
    %95 = vector.broadcast %94 : vector<1x256xi1> to vector<8x256xi1>
    %96 = arith.select %95, %90, %93 : vector<8x256xi1>, vector<8x256xf32>
    %cst_58 = arith.constant 0.000000e+00 : f32
    %97 = vector.broadcast %cst_58 : f32 to vector<8x256xf32>
    %98 = vector.shape_cast %34 : vector<1x256xi1> to vector<1x256xi1>
    %99 = vector.broadcast %98 : vector<1x256xi1> to vector<8x256xi1>
    %100 = arith.select %99, %92, %97 : vector<8x256xi1>, vector<8x256xf32>
    %c80 = arith.constant 80 : index
    %c0_59 = arith.constant 0 : index
    %101 = vector.load %arg8[%c80, %c0_59] : memref<144x256xf32, #tpu.memory_space<vmem>>, vector<8x256xf32>
    tpu.vector_store %arg8[%c80, %c0_59], %96 {strides = array<i32>} : memref<144x256xf32, #tpu.memory_space<vmem>>, vector<8x256xf32>,
    %c88 = arith.constant 88 : index
    %c0_60 = arith.constant 0 : index
    %102 = vector.load %arg8[%c88, %c0_60] : memref<144x256xf32, #tpu.memory_space<vmem>>, vector<8x256xf32>
    tpu.vector_store %arg8[%c88, %c0_60], %100 {strides = array<i32>} : memref<144x256xf32, #tpu.memory_space<vmem>>, vector<8x256xf32>,
    %c0_61 = arith.constant 0 : index
    %c0_62 = arith.constant 0 : index
    %c32_63 = arith.constant 32 : index
    %103 = vector.load %arg1[%c0_61, %c0_62, %c32_63] : memref<1x8x290xf32, #tpu.memory_space<vmem>>, vector<1x8x256xf32>
    %104 = vector.shape_cast %103 : vector<1x8x256xf32> to vector<8x256xf32>
    %c0_64 = arith.constant 0 : index
    %c0_65 = arith.constant 0 : index
    %c32_66 = arith.constant 32 : index
    %105 = vector.load %arg2[%c0_64, %c0_65, %c32_66] : memref<1x8x290xf32, #tpu.memory_space<vmem>>, vector<1x8x256xf32>
    %106 = vector.shape_cast %105 : vector<1x8x256xf32> to vector<8x256xf32>
    %cst_67 = arith.constant 0.000000e+00 : f32
    %107 = vector.broadcast %cst_67 : f32 to vector<8x256xf32>
    %108 = vector.shape_cast %25 : vector<1x256xi1> to vector<1x256xi1>
    %109 = vector.broadcast %108 : vector<1x256xi1> to vector<8x256xi1>
    %110 = arith.select %109, %104, %107 : vector<8x256xi1>, vector<8x256xf32>
    %cst_68 = arith.constant 0.000000e+00 : f32
    %111 = vector.broadcast %cst_68 : f32 to vector<8x256xf32>
    %112 = vector.shape_cast %25 : vector<1x256xi1> to vector<1x256xi1>
    %113 = vector.broadcast %112 : vector<1x256xi1> to vector<8x256xi1>
    %114 = arith.select %113, %106, %111 : vector<8x256xi1>, vector<8x256xf32>
    %c96 = arith.constant 96 : index
    %c0_69 = arith.constant 0 : index
    %115 = vector.load %arg8[%c96, %c0_69] : memref<144x256xf32, #tpu.memory_space<vmem>>, vector<8x256xf32>
    tpu.vector_store %arg8[%c96, %c0_69], %110 {strides = array<i32>} : memref<144x256xf32, #tpu.memory_space<vmem>>, vector<8x256xf32>,
    %c104 = arith.constant 104 : index
    %c0_70 = arith.constant 0 : index
    %116 = vector.load %arg8[%c104, %c0_70] : memref<144x256xf32, #tpu.memory_space<vmem>>, vector<8x256xf32>
    tpu.vector_store %arg8[%c104, %c0_70], %114 {strides = array<i32>} : memref<144x256xf32, #tpu.memory_space<vmem>>, vector<8x256xf32>,
    %c0_71 = arith.constant 0 : index
    %c0_72 = arith.constant 0 : index
    %c33 = arith.constant 33 : index
    %117 = vector.load %arg1[%c0_71, %c0_72, %c33] : memref<1x8x290xf32, #tpu.memory_space<vmem>>, vector<1x8x256xf32>
    %118 = vector.shape_cast %117 : vector<1x8x256xf32> to vector<8x256xf32>
    %c0_73 = arith.constant 0 : index
    %c0_74 = arith.constant 0 : index
    %c33_75 = arith.constant 33 : index
    %119 = vector.load %arg2[%c0_73, %c0_74, %c33_75] : memref<1x8x290xf32, #tpu.memory_space<vmem>>, vector<1x8x256xf32>
    %120 = vector.shape_cast %119 : vector<1x8x256xf32> to vector<8x256xf32>
    %c112 = arith.constant 112 : index
    %c0_76 = arith.constant 0 : index
    %121 = vector.load %arg8[%c112, %c0_76] : memref<144x256xf32, #tpu.memory_space<vmem>>, vector<8x256xf32>
    tpu.vector_store %arg8[%c112, %c0_76], %118 {strides = array<i32>} : memref<144x256xf32, #tpu.memory_space<vmem>>, vector<8x256xf32>,
    %c120 = arith.constant 120 : index
    %c0_77 = arith.constant 0 : index
    %122 = vector.load %arg8[%c120, %c0_77] : memref<144x256xf32, #tpu.memory_space<vmem>>, vector<8x256xf32>
    tpu.vector_store %arg8[%c120, %c0_77], %120 {strides = array<i32>} : memref<144x256xf32, #tpu.memory_space<vmem>>, vector<8x256xf32>,
    %c0_78 = arith.constant 0 : index
    %c0_79 = arith.constant 0 : index
    %c34 = arith.constant 34 : index
    %123 = vector.load %arg1[%c0_78, %c0_79, %c34] : memref<1x8x290xf32, #tpu.memory_space<vmem>>, vector<1x8x256xf32>
    %124 = vector.shape_cast %123 : vector<1x8x256xf32> to vector<8x256xf32>
    %c0_80 = arith.constant 0 : index
    %c0_81 = arith.constant 0 : index
    %c34_82 = arith.constant 34 : index
    %125 = vector.load %arg2[%c0_80, %c0_81, %c34_82] : memref<1x8x290xf32, #tpu.memory_space<vmem>>, vector<1x8x256xf32>
    %126 = vector.shape_cast %125 : vector<1x8x256xf32> to vector<8x256xf32>
    %cst_83 = arith.constant 0.000000e+00 : f32
    %127 = vector.broadcast %cst_83 : f32 to vector<8x256xf32>
    %128 = vector.shape_cast %34 : vector<1x256xi1> to vector<1x256xi1>
    %129 = vector.broadcast %128 : vector<1x256xi1> to vector<8x256xi1>
    %130 = arith.select %129, %124, %127 : vector<8x256xi1>, vector<8x256xf32>
    %cst_84 = arith.constant 0.000000e+00 : f32
    %131 = vector.broadcast %cst_84 : f32 to vector<8x256xf32>
    %132 = vector.shape_cast %34 : vector<1x256xi1> to vector<1x256xi1>
    %133 = vector.broadcast %132 : vector<1x256xi1> to vector<8x256xi1>
    %134 = arith.select %133, %126, %131 : vector<8x256xi1>, vector<8x256xf32>
    %c128 = arith.constant 128 : index
    %c0_85 = arith.constant 0 : index
    %135 = vector.load %arg8[%c128, %c0_85] : memref<144x256xf32, #tpu.memory_space<vmem>>, vector<8x256xf32>
    tpu.vector_store %arg8[%c128, %c0_85], %130 {strides = array<i32>} : memref<144x256xf32, #tpu.memory_space<vmem>>, vector<8x256xf32>,
    %c136 = arith.constant 136 : index
    %c0_86 = arith.constant 0 : index
    %136 = vector.load %arg8[%c136, %c0_86] : memref<144x256xf32, #tpu.memory_space<vmem>>, vector<8x256xf32>
    tpu.vector_store %arg8[%c136, %c0_86], %134 {strides = array<i32>} : memref<144x256xf32, #tpu.memory_space<vmem>>, vector<8x256xf32>,
    %c0_87 = arith.constant 0 : index
    %c0_88 = arith.constant 0 : index
    %137 = vector.load %arg4[%c0_87, %c0_88] : memref<32x144xf32, #tpu.memory_space<vmem>>, vector<32x144xf32>
    %c0_89 = arith.constant 0 : index
    %c0_90 = arith.constant 0 : index
    %138 = vector.load %arg8[%c0_89, %c0_90] : memref<144x256xf32, #tpu.memory_space<vmem>>, vector<144x256xf32>
    %cst_91 = arith.constant dense<0.000000e+00> : vector<32x256xf32>
    %139 = tpu.matmul %137, %138, %cst_91 {dimension_numbers = #tpu.dot_dimension_numbers<[1], [0], [0], [1], [0, 0, 1, 1], [], []>} : vector<32x144xf32>, vector<144x256xf32>, vector<32x256xf32> -> vector<32x256xf32>
    %c0_92 = arith.constant 0 : index
    %c0_93 = arith.constant 0 : index
    %140 = vector.load %arg5[%c0_92, %c0_93] : memref<32x1xf32, #tpu.memory_space<vmem>>, vector<32x1xf32>
    %141 = vector.broadcast %140 : vector<32x1xf32> to vector<32x256xf32>
    %142 = arith.addf %139, %141 : vector<32x256xf32>
    %143 = vector.extract_strided_slice %142 {offsets = [0, 0], sizes = [8, 256], strides = [1, 1]} : vector<32x256xf32> to vector<8x256xf32>
    %144 = arith.negf %143 : vector<8x256xf32>
    %145 = math.exp %144 : vector<8x256xf32>
    %cst_94 = arith.constant 1.000000e+00 : f32
    %146 = vector.broadcast %cst_94 : f32 to vector<8x256xf32>
    %147 = arith.addf %146, %145 : vector<8x256xf32>
    %148 = arith.divf %146, %147 : vector<8x256xf32>
    %149 = vector.extract_strided_slice %142 {offsets = [8, 0], sizes = [8, 256], strides = [1, 1]} : vector<32x256xf32> to vector<8x256xf32>
    %150 = arith.negf %149 : vector<8x256xf32>
    %151 = math.exp %150 : vector<8x256xf32>
    %cst_95 = arith.constant 1.000000e+00 : f32
    %152 = vector.broadcast %cst_95 : f32 to vector<8x256xf32>
    %153 = arith.addf %152, %151 : vector<8x256xf32>
    %154 = arith.divf %152, %153 : vector<8x256xf32>
    %155 = vector.extract_strided_slice %142 {offsets = [16, 0], sizes = [8, 256], strides = [1, 1]} : vector<32x256xf32> to vector<8x256xf32>
    %156 = math.tanh %155 : vector<8x256xf32>
    %157 = vector.extract_strided_slice %142 {offsets = [24, 0], sizes = [8, 256], strides = [1, 1]} : vector<32x256xf32> to vector<8x256xf32>
    %158 = arith.negf %157 : vector<8x256xf32>
    %159 = math.exp %158 : vector<8x256xf32>
    %cst_96 = arith.constant 1.000000e+00 : f32
    %160 = vector.broadcast %cst_96 : f32 to vector<8x256xf32>
    %161 = arith.addf %160, %159 : vector<8x256xf32>
    %162 = arith.divf %160, %161 : vector<8x256xf32>
    %c0_97 = arith.constant 0 : index
    %c0_98 = arith.constant 0 : index
    %c0_99 = arith.constant 0 : index
    %163 = vector.load %arg3[%c0_97, %c0_98, %c0_99] : memref<1x8x256xf32, #tpu.memory_space<vmem>>, vector<1x8x256xf32>
    %164 = vector.shape_cast %163 : vector<1x8x256xf32> to vector<8x256xf32>
    %165 = arith.mulf %154, %164 : vector<8x256xf32>
    %166 = arith.mulf %148, %156 : vector<8x256xf32>
    %167 = arith.addf %165, %166 : vector<8x256xf32>
    %168 = math.tanh %167 : vector<8x256xf32>
    %169 = arith.mulf %162, %168 : vector<8x256xf32>
    %c0_100 = arith.constant 0 : index
    %c0_101 = arith.constant 0 : index
    %c0_102 = arith.constant 0 : index
    %170 = vector.load %arg6[%c0_100, %c0_101, %c0_102] : memref<1x8x256xf32, #tpu.memory_space<vmem>>, vector<1x8x256xf32>
    %171 = vector.shape_cast %170 : vector<1x8x256xf32> to vector<8x256xf32>
    %172 = vector.shape_cast %169 : vector<8x256xf32> to vector<1x8x256xf32>
    tpu.vector_store %arg6[%c0_100, %c0_101, %c0_102], %172 {strides = array<i32>} : memref<1x8x256xf32, #tpu.memory_space<vmem>>, vector<1x8x256xf32>,
    %c0_103 = arith.constant 0 : index
    %c0_104 = arith.constant 0 : index
    %c0_105 = arith.constant 0 : index
    %173 = vector.load %arg7[%c0_103, %c0_104, %c0_105] : memref<1x8x256xf32, #tpu.memory_space<vmem>>, vector<1x8x256xf32>
    %174 = vector.shape_cast %173 : vector<1x8x256xf32> to vector<8x256xf32>
    %175 = vector.shape_cast %167 : vector<8x256xf32> to vector<1x8x256xf32>
    tpu.vector_store %arg7[%c0_103, %c0_104, %c0_105], %175 {strides = array<i32>} : memref<1x8x256xf32, #tpu.memory_space<vmem>>, vector<1x8x256xf32>,
    return
  }
  func.func @transform_0(%arg0: i32) -> (i32, i32, i32) {
    %c0_i32 = arith.constant 0 : i32
    %c0_i32_0 = arith.constant 0 : i32
    %c0_i32_1 = arith.constant 0 : i32
    return %arg0, %c0_i32, %c0_i32_0 : i32, i32, i32
  }
  func.func @transform_1(%arg0: i32) -> (i32, i32, i32) {
    %c0_i32 = arith.constant 0 : i32
    %c0_i32_0 = arith.constant 0 : i32
    %c0_i32_1 = arith.constant 0 : i32
    return %arg0, %c0_i32, %c0_i32_0 : i32, i32, i32
  }
  func.func @transform_2(%arg0: i32) -> (i32, i32, i32) {
    %c0_i32 = arith.constant 0 : i32
    %c0_i32_0 = arith.constant 0 : i32
    %c0_i32_1 = arith.constant 0 : i32
    return %arg0, %c0_i32, %c0_i32_0 : i32, i32, i32
  }
  func.func @transform_3(%arg0: i32) -> (i32, i32) {
    %c0_i32 = arith.constant 0 : i32
    %c0_i32_0 = arith.constant 0 : i32
    %c0_i32_1 = arith.constant 0 : i32
    return %c0_i32, %c0_i32_0 : i32, i32
  }
  func.func @transform_4(%arg0: i32) -> (i32, i32) {
    %c0_i32 = arith.constant 0 : i32
    %c0_i32_0 = arith.constant 0 : i32
    %c0_i32_1 = arith.constant 0 : i32
    return %c0_i32, %c0_i32_0 : i32, i32
  }
  func.func @transform_5(%arg0: i32) -> (i32, i32, i32) {
    %c0_i32 = arith.constant 0 : i32
    %c0_i32_0 = arith.constant 0 : i32
    %c0_i32_1 = arith.constant 0 : i32
    return %arg0, %c0_i32, %c0_i32_0 : i32, i32, i32
  }
  func.func @transform_6(%arg0: i32) -> (i32, i32, i32) {
    %c0_i32 = arith.constant 0 : i32
    %c0_i32_0 = arith.constant 0 : i32
    %c0_i32_1 = arith.constant 0 : i32
    return %arg0, %c0_i32, %c0_i32_0 : i32, i32, i32
  }
}

</mosaic_0001>

<bundles_post_ra>
// kernel: tpu_custom_call.1
= control target key start
LH: loop header
LB: loop body
LE: loop exit
PB: predicated region body
PF: predicated region fallthrough
CT: control target
= control target key end

     0   :  { %s2131_s0 = inlined_call_operand.hbm [shape: f32[2,8,290], index: 0, kind: input, shape index: {}]   ;;  %s2132_s1 = inlined_call_operand.hbm [shape: f32[2,8,290], index: 1, kind: input, shape index: {}]   ;;  %s2133_s2 = inlined_call_operand.vmem [shape: f32[2,8,256], index: 2, kind: input, shape index: {}]   ;;  %s2134_s3 = inlined_call_operand.hbm [shape: f32[32,144], index: 3, kind: input, shape index: {}]   ;;  %s2135_s4 = inlined_call_operand.vmem [shape: f32[32,1], index: 4, kind: input, shape index: {}]   ;;  %s2136_s5 = inlined_call_operand.hbm [shape: f32[2,8,256], index: 5, kind: output, shape index: {0}]   ;;  %s2137_s6 = inlined_call_operand.hbm [shape: f32[2,8,256], index: 6, kind: output, shape index: {1}]  }
   0x1   :  { %2143 = sst [smem:[#allocation17_spill]] %s2134_s3 }
   0x2   :  { %12 = vsyncpa [#allocation4], 0 }
   0x3   :  { %14 = vsyncpa [#allocation4 + $0x1], 0 }
   0x4   :  { %15 = vsyncpa [#allocation7], 0 }
   0x5   :  { %17 = vsyncpa [#allocation7 + $0x1], 0 }
   0x6   :  { %18 = vsyncpa [#allocation5], 0 }
   0x7   :  { %20 = vsyncpa [#allocation5 + $0x1], 0 }
   0x8   :  { %21 = vsyncpa [#allocation11], 0 }
   0x9   :  { %23 = vsyncpa [#allocation11 + $0x1], 0  ;;  %s1741_s21 = smov 0   ;;  %s1743_s22 = smov 0  }
   0xa   :  { %s1745_s23 = smov 0   ;;  %s1747_s24 = smov 0  }
   0xb LB: > { %s1762_s25 = sadd.s32 4294967295, %s1688_s24   ;;  %s1134_s26 = sadd.s32 4294967294, %s1688_s24   ;;  %s1688_s24 = sphi %s1747_s24, %s2171_s24   ;;  %s1684_s23 = sphi %s1745_s23, %s2170_s23   ;;  %s1680_s22 = sphi %s1743_s22, %s2169_s22   ;;  %s1676_s21 = sphi %s1741_s21, %s2168_s21  }
   0xc   : > { %p49_p0 = scmp.ne.s32.totalorder %s1680_s22, %s1676_s21  ;;  %p2138_p1 = scmp.eq.s32.totalorder %s1762_s25, 0 }
   0xd   : > { %p173_p3 = scmp.eq.s32.totalorder %s1134_s26, 1  ;;  %p1135_p5 = scmp.ge.s32.totalorder %s1688_s24, 1 }
   0xe   : > { %p1771_p4 = por %p2138_p1, %p49_p0  ;;  %p206_p7 = scmp.lt.s32.totalorder %s1688_s24, 3 }
   0xf   : > { %p1776_p6 = por %p173_p3, %p49_p0  ;;  %s1690_s30 = smov [#allocation8]  }
  0x10   : > { %s2144_s27 = scalar_select %p1771_p4, 1, 0 }
  0x11   : > { %s2145_s28 = scalar_select %p1776_p6, 1, 0 }
  0x12   : > { %p1781_p8 = pnand %p1135_p5, %p206_p7  ;;  %s218_s7 = sshll.u32 %s1690_s30, 4  ;;  %s1785_s7 = int_to_ptr.vmem [resolvable:$true] %s218_s7 }
  0x13   : > { %s1797_s9 = sadd.s32 1, %s1688_s24   ;;  %s36_s10 = sadd.s32 1, %s1684_s23 }
  0x14   : > { %s2146_s29 = scalar_select %p1781_p8, 1, 0 }
  0x15   : > { %p1274_p9 = pneg %p1781_p8  ;;  %s33_s11 = ssub.s32 %s1688_s24, %s1797_s9 }
  0x16   : > { %s2148_s3 = sld [smem:[#allocation17_spill]] }
  0x17   : > { %p1792_p11 = pnand %p1274_p9, %p2138_p1 }
  0x19   : > { %p1496_p13 = pneg %p1792_p11 }
  0x1c   : > { %s1494_s14 = scalar_lea.hbm %s2148_s3, 1024 }
  0x1d   : > { %p1495_p12 = scmp.ne.s32.totalorder %s2148_s3, %s1494_s14  ;;  %p1501_p5 = scmp.lt.u32.totalorder %s1494_s14, %s2148_s3 }
  0x1f   : > { %p1497_p0 = pnand %p1496_p13, %p1495_p12 }
  0x21   : > { %p1498_p3 = pneg %p1497_p0 }
  0x23   : > { %p1503_p7 = pnand %p1501_p5, %p1498_p3 }
  0x25   : > { %1506 = shalt.err (!%p1503_p7)
}
  0x26   : > { %s1507_s19 = scalar_lea.vmem %s1785_s7, 1024  ;;  %p1515_p2 = scmp.lt.s32.totalorder %s1785_s7, %s1785_s7 }
  0x27   : > { %p1508_p9 = scmp.ne.s32.totalorder %s1785_s7, %s1507_s19  ;;  %p1516_p6 = scmp.lt.s32.totalorder %s1507_s19, %s1507_s19 }
  0x29   : > { %p1510_p10 = pnand %p1508_p9, %p1496_p13  ;;  %p1517_p4 = por %p1516_p6, %p1515_p2 }
  0x2b   : > { %p1511_p1 = pneg %p1510_p10 }
  0x2d   : > { %p1518_p8 = pnand %p1517_p4, %p1511_p1 }
  0x2f   : > { %1521 = shalt.err (!%p1518_p8)
}
  0x30   : > { %s1691_s20 = smov 256   ;;  %s1692_s26 = smov 16  }
  0x31   : > { %1277 = dma.hbm_to_vmem [thread:$0]  (!%p1792_p11), %s2148_s3, 1024, %s1785_s7, [#allocation7], %s1691_s20, %s1691_s20, %s1692_s26  }
  0x32   : > { %p34_p1 = scmp.eq.s32.totalorder %s33_s11, 0  ;;  %p43_p2 = scmp.ne.s32.totalorder %s1684_s23, %s1680_s22 }
  0x33   : > { %p44_p4 = scmp.eq.s32.totalorder %s1688_s24, 0  ;;  %p1293_p6 = scmp.lt.s32.totalorder %s1688_s24, 2 }
  0x34   : > { %s1828_s13 = scalar_select %p34_p1, %s1684_s23, %s36_s10  }
  0x35   : > { %p45_p8 = por %p44_p4, %p43_p2  ;;  %p2149_p10 = scmp.eq.s32.totalorder %s1762_s25, 1 }
  0x36   : > { %s235_s15 = sand.u32 1, %s1684_s23   ;;  %s2141_s16 = smul.u32 384, %s1688_s24 }
  0x37   : > { %p1832_p12 = por %p2149_p10, %p43_p2  ;;  %s1838_s17 = smul.u32 24, %s235_s15 }
  0x38   : > { %s1845_s7 = scalar_lea.hbm %s2131_s0, %s2141_s16  ;;  %p1847_p11 = pnand %p1293_p6, %p45_p8 }
  0x39   : > { %s2150_s14 = scalar_select %p1832_p12, 1, 0 }
  0x3a   : > { %s254_s11 = sand.u32 1, %s1688_s24   ;;  %s239_s19 = scalar_lea.vmem [#allocation3], %s1838_s17 }
  0x3b   : > { %s247_s20 = sshll.u32 %s239_s19, 4  ;;  %s236_s26 = scalar_lea.sflag [#allocation4], %s235_s15  ;;  %s1853_s20 = int_to_ptr.vmem [resolvable:$true] %s247_s20 }
  0x3c   : > { %s1522_s30 = scalar_lea.hbm %s1845_s7, 384  ;;  %p1524_p0 = pneg %p1847_p11 }
  0x3d   : > { %p1523_p13 = scmp.ne.s32.totalorder %s1845_s7, %s1522_s30  ;;  %s1527_s18 = scalar_lea.hbm %s2131_s0, 768 }
  0x3e   : > { %p1528_p7 = scmp.lt.u32.totalorder %s1845_s7, %s2131_s0  ;;  %p1529_p9 = scmp.lt.u32.totalorder %s1527_s18, %s1522_s30 }
  0x3f   : > { %p1525_p3 = pnand %p1524_p0, %p1523_p13  ;;  %p1531_p2 = scmp.lt.u32.totalorder %s1522_s30, %s1845_s7 }
  0x40   : > { %p1530_p1 = por %p1529_p9, %p1528_p7 }
  0x41   : > { %p1526_p5 = pneg %p1525_p3 }
  0x42   : > { %p1532_p4 = por %p1531_p2, %p1530_p1 }
  0x44   : > { %p1533_p6 = pnand %p1532_p4, %p1526_p5 }
  0x46   : > { %1536 = shalt.err (!%p1533_p6)
}
  0x47   : > { %s1537_s15 = scalar_lea.vmem %s1853_s20, 384  ;;  %s1693_s19 = smov [#allocation3]  }
  0x48   : > { %p1538_p8 = scmp.ne.s32.totalorder %s1853_s20, %s1537_s15  ;;  %s1542_s12 = sshll.u32 %s1693_s19, 4  ;;  %s1543_s12 = int_to_ptr.vmem [resolvable:$false] %s1542_s12 }
  0x49   : > { %s1544_s3 = scalar_lea.vmem %s1543_s12, 768  ;;  %p1545_p3 = scmp.lt.s32.totalorder %s1853_s20, %s1543_s12 }
  0x4a   : > { %p1540_p10 = pnand %p1538_p8, %p1524_p0  ;;  %p1546_p7 = scmp.lt.s32.totalorder %s1544_s3, %s1537_s15 }
  0x4c   : > { %p1541_p13 = pneg %p1540_p10  ;;  %p1547_p9 = por %p1546_p7, %p1545_p3 }
  0x4e   : > { %p1548_p1 = pnand %p1547_p9, %p1541_p13 }
  0x50   : > { %1551 = shalt.err (!%p1548_p1)
}
  0x51   : > { %1281 = dma.hbm_to_vmem [thread:$0]  (!%p1847_p11), %s1845_s7, 384, %s1853_s20, %s236_s26  }
  0x52   : > { %s2152_s16 = smul.u32 384, %s1688_s24  ;;  %s258_s15 = scalar_lea.vmem [#allocation6], %s1838_s17 }
  0x53   : > { %s266_s19 = sshll.u32 %s258_s15, 4  ;;  %s255_s12 = scalar_lea.sflag [#allocation7], %s254_s11  ;;  %s267_s19 = int_to_ptr.vmem [resolvable:$true] %s266_s19 }
  0x54   : > { %s1885_s18 = scalar_lea.hbm %s2132_s1, %s2152_s16  ;;  %s1557_s26 = scalar_lea.hbm %s2132_s1, 768 }
  0x55   : > { %s1552_s3 = scalar_lea.hbm %s1885_s18, 384  ;;  %p1558_p6 = scmp.lt.u32.totalorder %s1885_s18, %s2132_s1 }
  0x56   : > { %p1553_p5 = scmp.ne.s32.totalorder %s1885_s18, %s1552_s3  ;;  %p1559_p8 = scmp.lt.u32.totalorder %s1557_s26, %s1552_s3 }
  0x57   : > { %p1561_p13 = scmp.lt.u32.totalorder %s1552_s3, %s1885_s18 }
  0x58   : > { %p1555_p2 = pnand %p1553_p5, %p1524_p0  ;;  %p1560_p10 = por %p1559_p8, %p1558_p6 }
  0x5a   : > { %p1556_p4 = pneg %p1555_p2  ;;  %p1562_p3 = por %p1561_p13, %p1560_p10 }
  0x5c   : > { %p1563_p7 = pnand %p1562_p3, %p1556_p4 }
  0x5e   : > { %1566 = shalt.err (!%p1563_p7)
}
  0x5f   : > { %s1567_s17 = scalar_lea.vmem %s267_s19, 384  ;;  %s1694_s11 = smov [#allocation6]  }
  0x60   : > { %p1568_p9 = scmp.ne.s32.totalorder %s267_s19, %s1567_s17  ;;  %s1572_s8 = sshll.u32 %s1694_s11, 4  ;;  %s1573_s8 = int_to_ptr.vmem [resolvable:$false] %s1572_s8 }
  0x61   : > { %s1574_s15 = scalar_lea.vmem %s1573_s8, 768  ;;  %p1575_p2 = scmp.lt.s32.totalorder %s267_s19, %s1573_s8 }
  0x62   : > { %p1570_p1 = pnand %p1568_p9, %p1524_p0  ;;  %p1576_p12 = scmp.lt.s32.totalorder %s1574_s15, %s1567_s17 }
  0x64   : > { %p1571_p5 = pneg %p1570_p1  ;;  %p1577_p6 = por %p1576_p12, %p1575_p2 }
  0x66   : > { %p1578_p8 = pnand %p1577_p6, %p1571_p5 }
  0x68   : > { %1581 = shalt.err (!%p1578_p8)
}
  0x69   : > { %1284 = dma.hbm_to_vmem [thread:$0]  (!%p1847_p11), %s1885_s18, 384, %s267_s19, %s255_s12  }
  0x6a   : > { %p2153_p4 = scmp.ne.s32.totalorder %s2146_s29, 0 }
  0x6b   : > { %s1912_s3 = sand.u32 (!%p2153_p4), 1, %s1680_s22   ;;  %p2154_p0 = scmp.ne.s32.totalorder (!%p2153_p4), %s2144_s27, 0 }
  0x6c   : > { %283 = sbr.rel (%p2153_p4) target bundleno = 583 (0x247), region = 40  ;;  %s286_s20 = scalar_lea.sflag (!%p2153_p4), [#allocation4], %s1912_s3 }
  0x6d   : > { %s1261_s7 = smul.u32 (!%p2153_p4), 24, %s1912_s3 }
  0x6f   : > { %s289_s26 = scalar_lea.vmem (!%p2153_p4), [#allocation3], %s1261_s7 }
  0x73   : > { %1655 = dma.done.wait (%p2154_p0), %s286_s20, 384  }
  0x74   : > { %1657 = vsyncadd (%p2154_p0), %s286_s20, 4294966912  ;;  %s294_s10 = sand.u32 1, %s1762_s25   ;;  %s298_s29 = scalar_lea.vmem [#allocation6], %s1261_s7 }
  0x75   : > { %s295_s18 = scalar_lea.sflag [#allocation7], %s294_s10 }
  0x76   : > { %1659 = dma.done.wait (%p2154_p0), %s295_s18, 384  }
  0x77   : > { %1661 = vsyncadd (%p2154_p0), %s295_s18, 4294966912  ;;  %p2155_p12 = scmp.eq.s32.totalorder %s1762_s25, 0 }
  0x79   : > { %1663 = dma.done.wait (%p2155_p12), [#allocation7], 1024   ;;  %p2156_p11 = pmov %p2155_p12 }
  0x7a   : > { %v351_v0 = vlaneseq  ;;  %v411_v6 = vld [vmem:[%s289_s26 + $0x8] sm:$0xff]  ;;  %v412_v7 = vld [vmem:[%s289_s26 + $0x10] sm:$0xff]  ;;  %v410_v8 = vld [vmem:[%s289_s26] sm:$0xff]  ;;  %s1695_s27 = smov 127   ;;  %s1696_s19 = smov 126   ;;  %vm798_vm4 = vcmask 130048  }
  0x7b   : > { %1665 = vsyncadd (%p2156_p11), [#allocation7], 4294966272  ;;  %v1340_v9 = vpack.i.bf16 %v412_v7, %v411_v6  ;;  %v413_v10 = vld [vmem:[%s298_s29] sm:$0xff]  ;;  %v414_v11 = vld [vmem:[%s298_s29 + $0x8] sm:$0xff]  ;;  %s1697_s12 = smov 112   ;;  %s1698_s16 = smov 111  }
  0x7c   : > { %v1929_v1 = vand.u32 127, %v351_v0  ;;  %v415_v12 = vld [vmem:[%s298_s29 + $0x10] sm:$0xff]  ;;  %v1350_v14 = vpack.i.bf16 %v413_v10, %v410_v8  ;;  %v1191_v15 = vpack.c.bf16 %v414_v11, %v411_v6  ;;  %v1194_v16 = vpack.c.bf16 %v413_v10, %v410_v8  ;;  %s1699_s30 = smov 110   ;;  %s1700_s17 = smov 96   ;;  %v731_v20 = vld [vmem:[#allocation8 + $0x8] sm:$0xff]  ;;  %v776_v26 = vld [vmem:[%s2135_s4 + $0x10] sm:$0xff] }
  0x7d   : > { %1341 = vrot.lane.b32.xlu0 %v1340_v9, %s1695_s27  ;;  %v1345_v17 = vpack.i.bf16 %v415_v12, %v414_v11  ;;  %s1701_s11 = smov 95   ;;  %v735_v21 = vld [vmem:[#allocation8 + $0x28] sm:$0xff]  ;;  %1146 = vmatprep.mubr.msk.f32.mxu0 %vm798_vm4, %v731_v20  ;;  %s1702_s8 = smov 94   ;;  %v1703_v22 = vmov 0   ;;  %v774_v23 = vld [vmem:[%s2135_s4] sm:$0xff]  ;;  %v777_v25 = vld [vmem:[%s2135_s4 + $0x18] sm:$0xff] }
  0x7e   : > { %v1932_v2 = vadd.s32 128, %v1929_v1  ;;  %v358_v3 = vand.u32 15, %v1929_v1  ;;  %1351 = vrot.lane.b32.xlu1 %v1350_v14, %s1695_s27  ;;  %1148 = vmatprep.mubr.msk.f32.mxu1 %vm798_vm4, %v735_v21  ;;  %v775_v24 = vld [vmem:[%s2135_s4 + $0x8] sm:$0xff]  ;;  %vm425_vm5 = vcmask 1039360   ;;  %vm466_vm6 = vcmask 1031168   ;;  %p346_p10 = scmp.lt.s32.totalorder %s1762_s25, 1 }
  0x7f   : > { %1460 = vset.pattern.permute.xlu0 %v1703_v22  ;;  %1461 = vset.pattern.permute.xlu1 %v1703_v22  ;;  %vm507_vm10 = vcmask 916480   ;;  %vm548_vm12 = vcmask 908288   ;;  %vm585_vm13 = vcmask 900096   ;;  %vm626_vm14 = vcmask 785408   ;;  %s960_s18 = scalar_lea.sflag [#allocation11], %s1912_s3  ;;  %p2165_p3 = scmp.ne.s32.totalorder %s2150_s14, 0 }
  0x80   : > { %v365_v4 = vand.u32 15, %v1932_v2  ;;  %v378_v5 = vadd.s32 4294967295, %v358_v3  ;;  %v386_v38 = vadd.s32 1, %v358_v3  ;;  %vm667_vm15 = vcmask 777216  }
  0x81   : > { %1346 = vrot.lane.b32.xlu0 %v1345_v17, %s1695_s27  ;;  %s1704_s27 = smov [#allocation10]  }
  0x82   : > { %v379_v13 = vadd.s32 4294967295, %v365_v4  ;;  %vm380_vm0 = vcmp.ge.s32.totalorder %v378_v5, 0  ;;  %1356 = vrot.lane.b32.xlu1 %v1340_v9, %s1696_s19  ;;  %v387_v33 = vadd.s32 1, %v365_v4  ;;  %vm390_vm8 = vcmp.lt.s32.totalorder %v386_v38, 16 }
  0x83   : > { %vm1940_vm2 = vmpackc.low %vm380_vm0, %vm380_vm0  ;;  %vm704_vm0 = vcmask 769024  }
  0x84   : > { %vm381_vm1 = vcmp.ge.s32.totalorder %v379_v13, 0  ;;  %vm391_vm7 = vcmp.lt.s32.totalorder %v387_v33, 16  ;;  %vm1982_vm11 = vmpackc.low %vm390_vm8, %vm390_vm8 }
  0x85   : > { %vm1944_vm3 = vmpackc.low %vm381_vm1, %vm381_vm1  ;;  %1361 = vrot.lane.b32.xlu0 %v1345_v17, %s1696_s19 }
  0x86   : > { %1193 = vmatprep.subr.msk.bf16.mxu0 %vm1944_vm3, %v1191_v15  ;;  %1239 = vmatprep.subr.msk.bf16.mxu1 %vm1944_vm3, %v1191_v15  ;;  %vm1976_vm9 = vmpackc.low %vm391_vm7, %vm391_vm7 }
  0x87   : > { %1196 = vmatpush1.bf16.msk.msra.mxu0 %vm1940_vm2, %v1194_v16  ;;  %1248 = vmatpush1.bf16.msk.msra.mxu1 %vm1940_vm2, %v1194_v16 }
  0x88   : > { %1366 = vrot.lane.b32.xlu1 %v1350_v14, %s1696_s19  ;;  %s347_s19 = scalar_select %p346_p10, %s1762_s25, 1 }
  0x89   : > { %1371 = vrot.lane.b32.xlu0 %v1340_v9, %s1697_s12 }
  0x8c   : > { %1376 = vrot.lane.b32.xlu1 %v1345_v17, %s1697_s12 }
  0x8d   : > { %1381 = vrot.lane.b32.xlu0 %v1350_v14, %s1697_s12  ;;  %s1164_s12 = sshll.u32 %s347_s19, 4  ;;  %s1586_s19 = sshll.u32 %s1704_s27, 4  ;;  %s1587_s19 = int_to_ptr.vmem [resolvable:$false] %s1586_s19 }
  0x90   : > { %1386 = vrot.lane.b32.xlu1 %v1340_v9, %s1698_s16 }
  0x91   : > { %1391 = vrot.lane.b32.xlu0 %v1345_v17, %s1698_s16 }
  0x94   : > { %1396 = vrot.lane.b32.xlu1 %v1350_v14, %s1698_s16 }
  0x95   : > { %1401 = vrot.lane.b32.xlu0 %v1340_v9, %s1699_s30 }
  0x98   : > { %1406 = vrot.lane.b32.xlu1 %v1345_v17, %s1699_s30 }
  0x99   : > { %1411 = vrot.lane.b32.xlu0 %v1350_v14, %s1699_s30 }
  0x9c   : > { %1416 = vrot.lane.b32.xlu1 %v1340_v9, %s1700_s17 }
  0x9d   : > { %1421 = vrot.lane.b32.xlu0 %v1345_v17, %s1700_s17 }
  0xa0   : > { %1426 = vrot.lane.b32.xlu1 %v1350_v14, %s1700_s17  ;;  %s350_s17 = scalar_lea.vmem %s2133_s2, %s1164_s12  ;;  %s1588_s12 = scalar_lea.vmem %s1587_s19, 512 }
  0xa1   : > { %1431 = vrot.lane.b32.xlu0 %v1340_v9, %s1701_s11 }
  0xa4   : > { %1436 = vrot.lane.b32.xlu1 %v1345_v17, %s1701_s11 }
  0xa5   : > { %1441 = vrot.lane.b32.xlu0 %v1350_v14, %s1701_s11  ;;  %s1142_s11 = sshll.u32 %s1912_s3, 4 }
  0xa6   : > { %s345_s15 = scalar_lea.vmem [#allocation10], %s1142_s11 }
  0xa7   : > { %s988_s7 = sshll.u32 %s345_s15, 4  ;;  %s2056_s7 = int_to_ptr.vmem [resolvable:$true] %s988_s7 }
  0xa8   : > { %1446 = vrot.lane.b32.xlu1 %v1340_v9, %s1702_s8  ;;  %s1582_s29 = scalar_lea.vmem %s2056_s7, 256  ;;  %p1589_p1 = scmp.lt.s32.totalorder %s2056_s7, %s1587_s19 }
  0xa9   : > { %1451 = vrot.lane.b32.xlu0 %v1345_v17, %s1702_s8  ;;  %p1583_p13 = scmp.ne.s32.totalorder %s2056_s7, %s1582_s29  ;;  %p1590_p5 = scmp.lt.s32.totalorder %s1588_s12, %s1582_s29 }
  0xab   : > { %p1584_p7 = pnand %p1583_p13, %p2165_p3  ;;  %p1591_p2 = por %p1590_p5, %p1589_p1 }
  0xac   : > { %1456 = vrot.lane.b32.xlu1 %v1350_v14, %s1702_s8  ;;  %s1165_s8 = sshll.u32 %s1762_s25, 8 }
  0xad   : > { %780 = vperm.xlu0 %1460, %v774_v23   ;;  %s2054_s10 = scalar_lea.hbm %s2137_s6, %s1165_s8  ;;  %p1585_p9 = pneg %p1584_p7 }
  0xaf   : > { %p1592_p6 = pnand %p1591_p2, %p1585_p9 }
  0xb0   : > { %785 = vperm.xlu1 %1461, %v775_v24  }
  0xb1   : > { %795 = vperm.xlu0 %1460, %v777_v25  }
  0xb4   : > { %790 = vperm.xlu1 %1461, %v776_v26  }
  0xef   : > { %v1342_v27 = vpop.permute.xlu0 %1341 }
  0xf0   : > { %v1352_v28 = vpop.permute.xlu1 %1351  ;;  %v1344_v29 = vunpack.i.h.bf16 %v1342_v27  ;;  %v1343_v30 = vunpack.i.l.bf16 %v1342_v27 }
  0xf1   : > { %v1353_v31 = vunpack.i.l.bf16 %v1352_v28  ;;  %v1354_v34 = vunpack.i.h.bf16 %v1352_v28 }
  0xf2   : > { %v427_v39 = vsel %vm425_vm5, %v1343_v30, %v1344_v29 }
  0xf3   : > { %v1347_v32 = vpop.permute.xlu0 %1346  ;;  %v426_v40 = vsel %vm425_vm5, %v1353_v31, %v1343_v30 }
  0xf4   : > { %v1349_v35 = vunpack.i.h.bf16 %v1347_v32  ;;  %v1348_v36 = vunpack.i.l.bf16 %v1347_v32  ;;  %v1357_v37 = vpop.permute.xlu1 %1356 }
  0xf5   : > { %v1359_v41 = vunpack.i.h.bf16 %v1357_v37  ;;  %v1358_v42 = vunpack.i.l.bf16 %v1357_v37 }
  0xf6   : > { %v442_v43 = vsel %vm425_vm5, %v1348_v36, %v1349_v35  ;;  %v441_v44 = vsel %vm425_vm5, %v1354_v34, %v1348_v36 }
  0xf7   : > { %v1362_v45 = vpop.permute.xlu0 %1361  ;;  %v1197_v46 = vpack.c.bf16 %v442_v43, %v427_v39  ;;  %v1199_v47 = vpack.c.bf16 %v441_v44, %v426_v40  ;;  %v468_v53 = vsel %vm466_vm6, %v1358_v42, %v1359_v41 }
  0xf8   : > { %v1364_v48 = vunpack.i.h.bf16 %v1362_v45  ;;  %v1363_v49 = vunpack.i.l.bf16 %v1362_v45 }
  0xf9   : > { %1198 = vmatprep.subr.bf16.mxu0 %v1197_v46  ;;  %1240 = vmatprep.subr.bf16.mxu1 %v1197_v46 }
  0xfa   : > { %v1367_v50 = vpop.permute.xlu1 %1366  ;;  %v483_v54 = vsel %vm466_vm6, %v1363_v49, %v1364_v48  ;;  %1200 = vmatpush1.bf16.msra.mxu0 %v1199_v47  ;;  %1249 = vmatpush1.bf16.msra.mxu1 %v1199_v47 }
  0xfb   : > { %v1369_v51 = vunpack.i.h.bf16 %v1367_v50  ;;  %v1368_v52 = vunpack.i.l.bf16 %v1367_v50  ;;  %v1201_v56 = vpack.c.bf16 %v483_v54, %v468_v53  ;;  %v1372_v59 = vpop.permute.xlu0 %1371 }
  0xfc   : > { %v1374_v62 = vunpack.i.h.bf16 %v1372_v59  ;;  %v1373_v63 = vunpack.i.l.bf16 %v1372_v59 }
  0xfd   : > { %v482_v57 = vsel %vm466_vm6, %v1369_v51, %v1363_v49  ;;  %v467_v58 = vsel %vm466_vm6, %v1368_v52, %v1358_v42  ;;  %1203 = vmatprep.subr.msk.bf16.mxu0 %vm1976_vm9, %v1201_v56  ;;  %1241 = vmatprep.subr.msk.bf16.mxu1 %vm1976_vm9, %v1201_v56 }
  0xfe   : > { %v1204_v61 = vpack.c.bf16 %v482_v57, %v467_v58  ;;  %v1377_v0 = vpop.permute.xlu1 %1376  ;;  %v509_v3 = vsel %vm507_vm10, %v1373_v63, %v1374_v62 }
  0xff   : > { %v1379_v1 = vunpack.i.h.bf16 %v1377_v0  ;;  %v1378_v2 = vunpack.i.l.bf16 %v1377_v0  ;;  %v1382_v5 = vpop.permute.xlu0 %1381 }
 0x100   : > { %1206 = vmatpush1.bf16.msk.msra.mxu0 %vm1982_vm11, %v1204_v61  ;;  %1250 = vmatpush1.bf16.msk.msra.mxu1 %vm1982_vm11, %v1204_v61  ;;  %v1384_v7 = vunpack.i.h.bf16 %v1382_v5  ;;  %v1383_v8 = vunpack.i.l.bf16 %v1382_v5 }
 0x101   : > { %v524_v4 = vsel %vm507_vm10, %v1378_v2, %v1379_v1 }
 0x102   : > { %v1207_v6 = vpack.c.bf16 %v524_v4, %v509_v3  ;;  %v1387_v9 = vpop.permute.xlu1 %1386  ;;  %v508_v10 = vsel %vm507_vm10, %v1383_v8, %v1373_v63  ;;  %v523_v11 = vsel %vm507_vm10, %v1384_v7, %v1378_v2 }
 0x103   : > { %v1389_v12 = vunpack.i.h.bf16 %v1387_v9  ;;  %v1388_v13 = vunpack.i.l.bf16 %v1387_v9  ;;  %v1210_v14 = vpack.c.bf16 %v523_v11, %v508_v10  ;;  %v1392_v15 = vpop.permute.xlu0 %1391 }
 0x104   : > { %1209 = vmatprep.subr.msk.bf16.mxu0 %vm1944_vm3, %v1207_v6  ;;  %1242 = vmatprep.subr.msk.bf16.mxu1 %vm1944_vm3, %v1207_v6  ;;  %v1394_v16 = vunpack.i.h.bf16 %v1392_v15  ;;  %v1393_v17 = vunpack.i.l.bf16 %v1392_v15 }
 0x105   : > { %1212 = vmatpush1.bf16.msk.msra.mxu0 %vm1940_vm2, %v1210_v14  ;;  %1251 = vmatpush1.bf16.msk.msra.mxu1 %vm1940_vm2, %v1210_v14  ;;  %v550_v23 = vsel %vm548_vm12, %v1388_v13, %v1389_v12 }
 0x106   : > { %v1397_v20 = vpop.permute.xlu1 %1396  ;;  %v565_v24 = vsel %vm548_vm12, %v1393_v17, %v1394_v16 }
 0x107   : > { %v1399_v21 = vunpack.i.h.bf16 %v1397_v20  ;;  %v1398_v22 = vunpack.i.l.bf16 %v1397_v20  ;;  %v1402_v25 = vpop.permute.xlu0 %1401  ;;  %v1213_v26 = vpack.c.bf16 %v565_v24, %v550_v23 }
 0x108   : > { %v1404_v29 = vunpack.i.h.bf16 %v1402_v25  ;;  %v1403_v30 = vunpack.i.l.bf16 %v1402_v25 }
 0x109   : > { %v549_v27 = vsel %vm548_vm12, %v1398_v22, %v1388_v13  ;;  %v564_v28 = vsel %vm548_vm12, %v1399_v21, %v1393_v17  ;;  %1214 = vmatprep.subr.bf16.mxu0 %v1213_v26  ;;  %1243 = vmatprep.subr.bf16.mxu1 %v1213_v26 }
 0x10a   : > { %v1407_v31 = vpop.permute.xlu1 %1406  ;;  %v1215_v32 = vpack.c.bf16 %v564_v28, %v549_v27  ;;  %v587_v35 = vsel %vm585_vm13, %v1403_v30, %v1404_v29  ;;  %v730_v27 = vld [vmem:[#allocation8] sm:$0xff]  ;;  %v733_v29 = vld [vmem:[#allocation8 + $0x18] sm:$0xff] }
 0x10b   : > { %v1409_v33 = vunpack.i.h.bf16 %v1407_v31  ;;  %v1408_v34 = vunpack.i.l.bf16 %v1407_v31  ;;  %v1412_v37 = vpop.permute.xlu0 %1411  ;;  %v734_v28 = vld [vmem:[#allocation8 + $0x20] sm:$0xff]  ;;  %v732_v31 = vld [vmem:[#allocation8 + $0x10] sm:$0xff] }
 0x10c   : > { %1216 = vmatpush1.bf16.msra.mxu0 %v1215_v32  ;;  %1252 = vmatpush1.bf16.msra.mxu1 %v1215_v32  ;;  %v1414_v39 = vunpack.i.h.bf16 %v1412_v37  ;;  %v1413_v40 = vunpack.i.l.bf16 %v1412_v37  ;;  %v736_v32 = vld [vmem:[#allocation8 + $0x30] sm:$0xff] }
 0x10d   : > { %v602_v36 = vsel %vm585_vm13, %v1408_v34, %v1409_v33 }
 0x10e   : > { %v1217_v38 = vpack.c.bf16 %v602_v36, %v587_v35  ;;  %v1417_v41 = vpop.permute.xlu1 %1416  ;;  %v586_v42 = vsel %vm585_vm13, %v1413_v40, %v1403_v30  ;;  %v601_v43 = vsel %vm585_vm13, %v1414_v39, %v1408_v34  ;;  %v737_v30 = vld [vmem:[#allocation8 + $0x38] sm:$0xff] }
 0x10f   : > { %v1419_v44 = vunpack.i.h.bf16 %v1417_v41  ;;  %v1418_v45 = vunpack.i.l.bf16 %v1417_v41  ;;  %v1220_v46 = vpack.c.bf16 %v601_v43, %v586_v42  ;;  %v1422_v47 = vpop.permute.xlu0 %1421 }
 0x110   : > { %1219 = vmatprep.subr.msk.bf16.mxu0 %vm1976_vm9, %v1217_v38  ;;  %1244 = vmatprep.subr.msk.bf16.mxu1 %vm1976_vm9, %v1217_v38  ;;  %v1424_v48 = vunpack.i.h.bf16 %v1422_v47  ;;  %v1423_v49 = vunpack.i.l.bf16 %v1422_v47 }
 0x111   : > { %1222 = vmatpush1.bf16.msk.msra.mxu0 %vm1982_vm11, %v1220_v46  ;;  %1253 = vmatpush1.bf16.msk.msra.mxu1 %vm1982_vm11, %v1220_v46  ;;  %v628_v53 = vsel %vm626_vm14, %v1418_v45, %v1419_v44 }
 0x112   : > { %v1427_v50 = vpop.permute.xlu1 %1426  ;;  %v643_v54 = vsel %vm626_vm14, %v1423_v49, %v1424_v48 }
 0x113   : > { %v1429_v51 = vunpack.i.h.bf16 %v1427_v50  ;;  %v1428_v52 = vunpack.i.l.bf16 %v1427_v50  ;;  %v1223_v56 = vpack.c.bf16 %v643_v54, %v628_v53  ;;  %v1432_v59 = vpop.permute.xlu0 %1431 }
 0x114   : > { %v1434_v62 = vunpack.i.h.bf16 %v1432_v59  ;;  %v1433_v63 = vunpack.i.l.bf16 %v1432_v59 }
 0x115   : > { %v642_v57 = vsel %vm626_vm14, %v1429_v51, %v1423_v49  ;;  %v627_v58 = vsel %vm626_vm14, %v1428_v52, %v1418_v45  ;;  %1225 = vmatprep.subr.msk.bf16.mxu0 %vm1944_vm3, %v1223_v56  ;;  %1245 = vmatprep.subr.msk.bf16.mxu1 %vm1944_vm3, %v1223_v56 }
 0x116   : > { %v1226_v61 = vpack.c.bf16 %v642_v57, %v627_v58  ;;  %v1437_v0 = vpop.permute.xlu1 %1436  ;;  %v669_v3 = vsel %vm667_vm15, %v1433_v63, %v1434_v62 }
 0x117   : > { %v1439_v1 = vunpack.i.h.bf16 %v1437_v0  ;;  %v1438_v2 = vunpack.i.l.bf16 %v1437_v0  ;;  %v1442_v4 = vpop.permute.xlu0 %1441 }
 0x118   : > { %1228 = vmatpush1.bf16.msk.msra.mxu0 %vm1940_vm2, %v1226_v61  ;;  %1254 = vmatpush1.bf16.msk.msra.mxu1 %vm1940_vm2, %v1226_v61  ;;  %v1444_v6 = vunpack.i.h.bf16 %v1442_v4  ;;  %v1443_v7 = vunpack.i.l.bf16 %v1442_v4 }
 0x119   : > { %v684_v5 = vsel %vm667_vm15, %v1438_v2, %v1439_v1 }
 0x11a   : > { %v1447_v8 = vpop.permute.xlu1 %1446  ;;  %v1229_v9 = vpack.c.bf16 %v684_v5, %v669_v3  ;;  %v668_v19 = vsel %vm667_vm15, %v1443_v7, %v1433_v63  ;;  %v683_v12 = vsel %vm667_vm15, %v1444_v6, %v1438_v2 }
 0x11b   : > { %v1449_v10 = vunpack.i.h.bf16 %v1447_v8  ;;  %v1448_v11 = vunpack.i.l.bf16 %v1447_v8  ;;  %v1452_v18 = vpop.permute.xlu0 %1451  ;;  %v1231_v13 = vpack.c.bf16 %v683_v12, %v668_v19 }
 0x11c   : > { %1230 = vmatprep.subr.bf16.mxu0 %v1229_v9  ;;  %1246 = vmatprep.subr.bf16.mxu1 %v1229_v9  ;;  %v1454_v14 = vunpack.i.h.bf16 %v1452_v18  ;;  %v1453_v15 = vunpack.i.l.bf16 %v1452_v18  ;;  %v938_v9 = vld [vmem:[%s350_s17] sm:$0xff]  ;;  %v939_v18 = vld [vmem:[%s350_s17 + $0x8] sm:$0xff] }
 0x11d   : > { %1232 = vmatpush1.bf16.msra.mxu0 %v1231_v13  ;;  %1255 = vmatpush1.bf16.msra.mxu1 %v1231_v13  ;;  %v706_v21 = vsel %vm704_vm0, %v1448_v11, %v1449_v10 }
 0x11e   : > { %v1457_v16 = vpop.permute.xlu1 %1456  ;;  %v721_v22 = vsel %vm704_vm0, %v1453_v15, %v1454_v14 }
 0x11f   : > { %v1459_v17 = vunpack.i.h.bf16 %v1457_v16  ;;  %v1458_v20 = vunpack.i.l.bf16 %v1457_v16  ;;  %v1233_v23 = vpack.c.bf16 %v721_v22, %v706_v21 }
 0x121   : > { %v720_v24 = vsel %vm704_vm0, %v1459_v17, %v1453_v15  ;;  %v705_v25 = vsel %vm704_vm0, %v1458_v20, %v1448_v11  ;;  %1235 = vmatprep.subr.msk.bf16.mxu0 %vm1976_vm9, %v1233_v23  ;;  %1247 = vmatprep.subr.msk.bf16.mxu1 %vm1976_vm9, %v1233_v23 }
 0x122   : > { %v1236_v26 = vpack.c.bf16 %v720_v24, %v705_v25 }
 0x124   : > { %1238 = vmatpush1.bf16.msk.msra.mxu0 %vm1982_vm11, %v1236_v26  ;;  %1256 = vmatpush1.bf16.msk.msra.mxu1 %vm1982_vm11, %v1236_v26 }
 0x127   : > { %876 = vmatmul.mubr.f32.vlgmr.msra.gmra.mrb[0].mxu0 %v730_v27  ;;  %888 = vmatmul.mubr.f32.vlgmr.msra.gmra.mrb[0].mxu1 %v734_v28 }
 0x128   : > { %1147 = vmatprep.mubr.msk.f32.mxu0 %vm798_vm4, %v733_v29  ;;  %1149 = vmatprep.mubr.msk.f32.mxu1 %vm798_vm4, %v737_v30 }
 0x12b   : > { %882 = vmatmul.mubr.f32.gmra.mrb[2].mxu0 %v732_v31  ;;  %894 = vmatmul.mubr.f32.gmra.mrb[2].mxu1 %v736_v32 }
 0x12c   : > { %v781_v55 = vpop.permute.xlu0 %780 }
 0x12f   : > { %v786_v37 = vpop.permute.xlu1 %785 }
 0x130   : > { %v796_v46 = vpop.permute.xlu0 %795 }
 0x133   : > { %v791_v49 = vpop.permute.xlu1 %790 }
 0x1fa   : > { %v877_v33 = vpop.f32.mrb[0].mxu0  ;;  %v889_v34 = vpop.f32.mrb[0].mxu1 }
 0x1fb   : > { %v878_v35 = vadd.f32 %v877_v33, %v781_v55  ;;  %v879_v60 = vpop.f32.mrb[1].mxu0  ;;  %v891_v36 = vpop.f32.mrb[1].mxu1  ;;  %v890_v52 = vadd.f32 %v889_v34, %v791_v49 }
 0x1fc   : > { %v880_v38 = vadd.f32 %v879_v60, %v781_v55  ;;  %v892_v53 = vadd.f32 %v891_v36, %v791_v49 }
 0x1fd   : > { %v1150_v39 = vmul.f32 -1.442695, %v878_v35 }
 0x1fe   : > { %v1151_v40 = vmul.f32 -1.442695, %v880_v38  ;;  %v883_v41 = vpop.f32.mrb[2].mxu0  ;;  %v895_v42 = vpop.f32.mrb[2].mxu1 }
 0x1ff   : > { %1462 = vpow2.f32 %v1150_v39  ;;  %v884_v43 = vadd.f32 %v883_v41, %v786_v37  ;;  %v885_v44 = vpop.f32.mrb[3].mxu0  ;;  %v897_v45 = vpop.f32.mrb[3].mxu1  ;;  %v896_v51 = vadd.f32 %v895_v42, %v796_v46 }
 0x200   : > { %1464 = vpow2.f32 %v1151_v40  ;;  %v886_v47 = vadd.f32 %v885_v44, %v786_v37  ;;  %v898_v56 = vadd.f32 %v897_v45, %v796_v46 }
 0x201   : > { %v1152_v48 = vmul.f32 -1.442695, %v884_v43  ;;  %v1154_v54 = vmul.f32 -1.442695, %v896_v51 }
 0x202   : > { %v1153_v50 = vmul.f32 -1.442695, %v886_v47  ;;  %v1155_v62 = vmul.f32 -1.442695, %v898_v56 }
 0x203   : > { %1466 = vpow2.f32 %v1152_v48 }
 0x204   : > { %1468 = vpow2.f32 %v1153_v50 }
 0x205   : > { %1470 = vtanh.f32 %v890_v52 }
 0x206   : > { %1472 = vtanh.f32 %v892_v53 }
 0x207   : > { %1474 = vpow2.f32 %v1154_v54 }
 0x209   : > { %v1463_v57 = vpop.eup %1462 }
 0x20a   : > { %v1465_v58 = vpop.eup %1464  ;;  %v906_v59 = vadd.f32 1.0, %v1463_v57 }
 0x20b   : > { %v907_v61 = vadd.f32 1.0, %v1465_v58 }
 0x20c   : > { %1476 = vrcp.f32 %v906_v59 }
 0x20d   : > { %v1467_v63 = vpop.eup %1466  ;;  %1478 = vrcp.f32 %v907_v61 }
 0x20e   : > { %v918_v0 = vadd.f32 1.0, %v1467_v63  ;;  %v1469_v1 = vpop.eup %1468  ;;  %1480 = vpow2.f32 %v1155_v62 }
 0x20f   : > { %v919_v2 = vadd.f32 1.0, %v1469_v1  ;;  %v1471_v3 = vpop.eup %1470 }
 0x210   : > { %1482 = vrcp.f32 %v918_v0  ;;  %v1473_v4 = vpop.eup %1472 }
 0x211   : > { %1484 = vrcp.f32 %v919_v2  ;;  %v1475_v5 = vpop.eup %1474 }
 0x212   : > { %v932_v12 = vadd.f32 1.0, %v1475_v5 }
 0x214   : > { %1486 = vrcp.f32 %v932_v12 }
 0x216   : > { %v1477_v6 = vpop.eup %1476 }
 0x217   : > { %v1479_v7 = vpop.eup %1478  ;;  %v942_v8 = vmul.f32 %v1477_v6, %v1471_v3 }
 0x218   : > { %v943_v10 = vmul.f32 %v1479_v7, %v1473_v4  ;;  %v1481_v11 = vpop.eup %1480 }
 0x219   : > { %v933_v15 = vadd.f32 1.0, %v1481_v11 }
 0x21a   : > { %v1483_v19 = vpop.eup %1482 }
 0x21b   : > { %v940_v13 = vmul.f32 %v1483_v19, %v938_v9  ;;  %v1485_v14 = vpop.eup %1484 }
 0x21c   : > { %v941_v17 = vmul.f32 %v1485_v14, %v939_v18 }
 0x21d   : > { %v944_v16 = vadd.f32 %v942_v8, %v940_v13 }
 0x21e   : > { %v945_v20 = vadd.f32 %v943_v10, %v941_v17 }
 0x21f   : > { %1488 = vtanh.f32 %v944_v16  ;;  %952 = vst [vmem:[%s345_s15] sm:$0xff] %v944_v16 }
 0x220   : > { %1490 = vrcp.f32 %v933_v15  ;;  %953 = vst [vmem:[%s345_s15 + $0x8] sm:$0xff] %v945_v20 }
 0x221   : > { %1492 = vtanh.f32 %v945_v20 }
 0x222   : > { %1595 = shalt.err (!%p1592_p6)
}
 0x223   : > { %s1596_s16 = scalar_lea.hbm %s2054_s10, 256  ;;  %s1600_s15 = scalar_lea.hbm %s2137_s6, 512 }
 0x224   : > { %p1597_p8 = scmp.ne.s32.totalorder %s2054_s10, %s1596_s16  ;;  %p1601_p12 = scmp.lt.u32.totalorder %s2054_s10, %s2137_s6 }
 0x225   : > { %p1602_p11 = scmp.lt.u32.totalorder %s1600_s15, %s1596_s16  ;;  %p1604_p13 = scmp.lt.u32.totalorder %s1596_s16, %s2054_s10 }
 0x226   : > { %p1598_p4 = pnand %p1597_p8, %p2165_p3 }
 0x227   : > { %p1603_p10 = por %p1602_p11, %p1601_p12 }
 0x228   : > { %p1599_p0 = pneg %p1598_p4 }
 0x229   : > { %p1605_p7 = por %p1604_p13, %p1603_p10 }
 0x22b   : > { %p1606_p9 = pnand %p1605_p7, %p1599_p0 }
 0x22d   : > { %1609 = shalt.err (!%p1606_p9)
}
 0x22e   : > { %1271 = dma.vmem_to_hbm [thread:$0]  (%p2165_p3), %s2056_s7, 256, %s2054_s10, %s960_s18   ;;  %v1487_v21 = vpop.eup %1486 }
 0x22f   : > { %v1489_v22 = vpop.eup %1488  ;;  %s338_s29 = scalar_lea.vmem [#allocation9], %s1142_s11  ;;  %s2087_s16 = scalar_lea.hbm %s2136_s5, %s1165_s8 }
 0x230   : > { %s974_s27 = sshll.u32 %s338_s29, 4  ;;  %v1491_v23 = vpop.eup %1490  ;;  %v948_v24 = vmul.f32 %v1489_v22, %v1487_v21  ;;  %s955_s7 = scalar_lea.sflag [#allocation5], %s1912_s3  ;;  %s2089_s27 = int_to_ptr.vmem [resolvable:$true] %s974_s27 }
 0x231   : > { %v1493_v25 = vpop.eup %1492  ;;  %s1610_s11 = scalar_lea.vmem %s2089_s27, 256  ;;  %s1705_s10 = smov [#allocation9]  }
 0x232   : > { %v949_v26 = vmul.f32 %v1493_v25, %v1491_v23  ;;  %950 = vst [vmem:[%s338_s29] sm:$0xff] %v948_v24  ;;  %p1611_p1 = scmp.ne.s32.totalorder %s2089_s27, %s1610_s11  ;;  %s1614_s18 = sshll.u32 %s1705_s10, 4  ;;  %s1615_s18 = int_to_ptr.vmem [resolvable:$false] %s1614_s18 }
 0x233   : > { %s1616_s25 = scalar_lea.vmem %s1615_s18, 512  ;;  %p1617_p6 = scmp.lt.s32.totalorder %s2089_s27, %s1615_s18 }
 0x234   : > { %951 = vst [vmem:[%s338_s29 + $0x8] sm:$0xff] %v949_v26  ;;  %p1612_p5 = pnand %p1611_p1, %p2165_p3  ;;  %p1618_p8 = scmp.lt.s32.totalorder %s1616_s25, %s1610_s11 }
 0x236   : > { %p1613_p2 = pneg %p1612_p5  ;;  %p1619_p4 = por %p1618_p8, %p1617_p6 }
 0x238   : > { %p1620_p0 = pnand %p1619_p4, %p1613_p2 }
 0x23a   : > { %1623 = shalt.err (!%p1620_p0)
}
 0x23b   : > { %s1624_s3 = scalar_lea.hbm %s2087_s16, 256  ;;  %s1628_s17 = scalar_lea.hbm %s2136_s5, 512 }
 0x23c   : > { %p1625_p12 = scmp.ne.s32.totalorder %s2087_s16, %s1624_s3  ;;  %p1629_p13 = scmp.lt.u32.totalorder %s2087_s16, %s2136_s5 }
 0x23d   : > { %p1630_p7 = scmp.lt.u32.totalorder %s1628_s17, %s1624_s3  ;;  %p1632_p1 = scmp.lt.u32.totalorder %s1624_s3, %s2087_s16 }
 0x23e   : > { %p1626_p11 = pnand %p1625_p12, %p2165_p3 }
 0x23f   : > { %p1631_p9 = por %p1630_p7, %p1629_p13 }
 0x240   : > { %p1627_p10 = pneg %p1626_p11 }
 0x241   : > { %p1633_p5 = por %p1632_p1, %p1631_p9 }
 0x243   : > { %p1634_p2 = pnand %p1633_p5, %p1627_p10 }
 0x245   : > { %1637 = shalt.err (!%p1634_p2)
}
 0x246   : > { %1270 = dma.vmem_to_hbm [thread:$0]  (%p2165_p3), %s2089_s27, 256, %s2087_s16, %s955_s7  }
 0x247 PF: > { %s1000_s26 = sand.u32 1, %s1676_s21   ;;  %p2166_p6 = scmp.ne.s32.totalorder %s2145_s28, 0 }
 0x248   : > { %p2167_p8 = scmp.ge.s32.totalorder %s1688_s24, 2  ;;  %s1001_s29 = scalar_lea.sflag [#allocation5], %s1000_s26 }
 0x24a   : > { %p1286_p4 = pnand %p2167_p8, %p2166_p6 }
 0x24c   : > { %1667 = dma.done.wait (!%p1286_p4), %s1001_s29, 256  }
 0x24d   : > { %1669 = vsyncadd (!%p1286_p4), %s1001_s29, 4294967040  ;;  %s1010_s19 = scalar_lea.sflag [#allocation11], %s1000_s26 }
 0x24e   : > { %1671 = dma.done.wait (!%p1286_p4), %s1010_s19, 256  }
 0x24f   : > { %1673 = vsyncadd (!%p1286_p4), %s1010_s19, 4294967040  ;;  %p26_p3 = scmp.ge.s32.totalorder %s1797_s9, 4   ;;  %s2168_s21 = smov %s1680_s22 }
 0x250   : > { %s2169_s22 = smov %s1684_s23  ;;  %s2170_s23 = smov %s1828_s13 }
 0x251   : > { %s2171_s24 = smov %s1797_s9  ;;  %28 = sbr.rel (!%p26_p3) target bundleno = 11 (0xb), region = 122 }
 0x258   :  { %1015 = vsyncpa [#allocation4], 1 }
 0x259   :  { %1017 = vsyncpa [#allocation4 + $0x1], 1 }
 0x25a   :  { %1018 = vsyncpa [#allocation7], 1 }
 0x25b   :  { %1020 = vsyncpa [#allocation7 + $0x1], 1 }
 0x25c   :  { %1021 = vsyncpa [#allocation5], 1 }
 0x25d   :  { %1023 = vsyncpa [#allocation5 + $0x1], 1 }
 0x25e   :  { %1024 = vsyncpa [#allocation11], 1 }
 0x25f   :  { %1026 = vsyncpa [#allocation11 + $0x1], 1 }

</bundles_post_ra>
